<compile_context>
chip_gen: v6e
topology: v6e:2x2x1
jax: 0.10.0
libtpu: 0.0.40
codegen_flags: <defaults>
</compile_context>

<pallas_src>
import functools

import jax
import jax.numpy as jnp
from jax.experimental import pallas as pl
from jax.experimental.pallas import tpu as pltpu


def _round_up(x, m):
    return ((x + m - 1) // m) * m


# ---------------------------------------------------------------------------
# Kernel 1: fused Q/K/V projection.
#   Q = (q @ Wq + bq) * 1/sqrt(d)
#   K = k @ Wk + bk + abs_pos_K
#   V = k @ Wv + bv + abs_pos_V
# ---------------------------------------------------------------------------
def _proj_kernel(scale, q_in_ref, k_in_ref, apk_ref, apv_ref,
                 wq_ref, bq_ref, wk_ref, bk_ref, wv_ref, bv_ref,
                 q_out_ref, k_out_ref, v_out_ref):
    f32 = jnp.float32
    q_out_ref[...] = (jnp.dot(q_in_ref[...], wq_ref[...], preferred_element_type=f32)
                      + bq_ref[...]) * scale
    k_out_ref[...] = (jnp.dot(k_in_ref[...], wk_ref[...], preferred_element_type=f32)
                      + bk_ref[...] + apk_ref[...])
    v_out_ref[...] = (jnp.dot(k_in_ref[...], wv_ref[...], preferred_element_type=f32)
                      + bv_ref[...] + apv_ref[...])


def _qkv_proj(q2d, k2d, apk2d, apv2d, Wq, bq, Wk, bk, Wv, bv, scale):
    BL, H = q2d.shape
    tm = BL
    for cand in (512, 256, 128):
        if BL % cand == 0:
            tm = cand
            break

    def row():
        return pl.BlockSpec((tm, H), lambda i: (i, 0))

    def mat():
        return pl.BlockSpec((H, H), lambda i: (0, 0))

    def vec():
        return pl.BlockSpec((1, H), lambda i: (0, 0))

    out_shapes = tuple(jax.ShapeDtypeStruct((BL, H), jnp.float32) for _ in range(3))
    return pl.pallas_call(
        functools.partial(_proj_kernel, scale),
        out_shape=out_shapes,
        grid=(BL // tm,),
        in_specs=[row(), row(), row(), row(),
                  mat(), vec(), mat(), vec(), mat(), vec()],
        out_specs=[row(), row(), row()],
        compiler_params=pltpu.CompilerParams(dimension_semantics=("parallel",)),
    )(q2d, k2d, apk2d, apv2d, Wq, bq, Wk, bk, Wv, bv)


# ---------------------------------------------------------------------------
# Kernel 2: time-aware attention core (full-lane-width flash-style softmax).
# grid = (B, q-tiles, kv-tiles); heads never appear explicitly in the kernel —
# the block-diagonal head-segment matrix does the per-head reduction on the MXU
# and per-head statistics are replicated across each head's lanes.
# ---------------------------------------------------------------------------
def _attn_kernel(L_valid, Lp, q_ref, k_ref, v_ref, tk_ref, tv_ref,
                 am_ref, pad_ref, bd_ref, o_ref, m_sc, l_sc):
    ki = pl.program_id(2)
    _, tq, H = q_ref.shape
    tkv = k_ref.shape[1]
    f32 = jnp.float32
    NEG = f32(-2.0 ** 32 + 1)   # PyTorch's mask value (keeps masked rows' uniform softmax)
    VERY_NEG = f32(-1e30)       # removes length-padding keys from even that uniform softmax

    @pl.when(ki == 0)
    def _init():
        m_sc[...] = jnp.full(m_sc.shape, VERY_NEG, f32)
        l_sc[...] = jnp.zeros(l_sc.shape, f32)
        o_ref[...] = jnp.zeros(o_ref.shape, f32)

    q = q_ref[0]                                    # (tq, H)  pre-scaled by 1/sqrt(d)
    k = k_ref[0]                                    # (tkv, H) abs_pos_K folded in
    v = v_ref[0]                                    # (tkv, H) abs_pos_V folded in

    # Full-width scores: s[i,j,c] = sum_{c' in head(c)} q[i,c'] * (k[j,c'] + tK[i,j,c'])
    # One lane-dense VPU multiply + a single MXU dot against the block-diagonal matrix.
    kk = tk_ref[0].astype(f32) + k[None, :, :]      # (tq, tkv, H)
    prod = kk * q[:, None, :]                       # (tq, tkv, H)
    s = jnp.dot(prod.reshape(tq * tkv, H), bd_ref[...],
                preferred_element_type=f32).reshape(tq, tkv, H)

    # Masks: streamed (L,L) attn mask + (B,L) row-pad mask; length padding via iota.
    masked = jnp.logical_or(am_ref[...] > 0.5, pad_ref[0][:, :, None] > 0.5)  # (tq,tkv,1)
    s = jnp.where(masked, NEG, s)
    if Lp > L_valid:
        col = ki * tkv + jax.lax.broadcasted_iota(jnp.int32, (tq, tkv), 1)
        s = jnp.where((col >= L_valid)[:, :, None], VERY_NEG, s)

    # Online softmax across kv blocks, kept at full lane width (per-head stats replicated
    # over that head's lanes -> every update is a dense vreg op).
    m_prev = m_sc[...]
    m_new = jnp.maximum(m_prev, jnp.max(s, axis=1))
    alpha = jnp.exp(m_prev - m_new)
    p = jnp.exp(s - m_new[:, None, :])              # (tq, tkv, H)
    l_sc[...] = alpha * l_sc[...] + jnp.sum(p, axis=1)
    m_sc[...] = m_new

    # Output: columns of head h are weighted by that head's probabilities, which is exactly
    # what the replicated-p layout provides. Accumulate directly into the resident o_ref.
    vv = tv_ref[0].astype(f32) + v[None, :, :]      # (tq, tkv, H)
    o_ref[0] = alpha * o_ref[0] + jnp.sum(p * vv, axis=1)

    @pl.when(ki == pl.num_programs(2) - 1)
    def _finalize():
        o_ref[0] = o_ref[0] / l_sc[...]             # exact division, once per output tile
    # TODO(synk): attention dropout omitted (eval-mode / p=0 semantics).


def _attn_vmem_estimate(tq, tkv, H, time_itemsize):
    blk = tq * tkv * H
    dbuf = 2 * (tq * H * 4                 # Q
                + 2 * tkv * H * 4          # K, V
                + 2 * blk * time_itemsize  # time_K, time_V
                + tq * tkv * 4             # attn mask tile
                + tq * 4)                  # row pad mask
    dbuf += 2 * tq * H * 4                 # output block (double buffered)
    interm = 3 * blk * 4                   # f32 intermediates (prod / scores / p*vv chain)
    fixed = H * H * 4 + 2 * tq * H * 4 + (2 << 20)
    return dbuf + interm + fixed


def _plan_attention(L, H, time_itemsize):
    try:
        cap = int(pltpu.get_tpu_info().vmem_capacity_bytes)
    except Exception:
        cap = 64 * 1024 * 1024             # conservative: v7x has 64 MiB per TensorCore
    budget = max(32 * 1024 * 1024, min(int(0.7 * cap), 48 * 1024 * 1024))

    if L <= 128:
        Lp = _round_up(L, 8)
        tq = tkv = Lp
    else:
        # TODO(synk): tkv=256 on v6e (256-wide MXU, 128 MiB VMEM).
        tkv = 128
        tq = 128
        while tq > 8 and _attn_vmem_estimate(tq, tkv, H, time_itemsize) > budget:
            tq //= 2
        Lp = _round_up(L, tkv)

    est = _attn_vmem_estimate(tq, tkv, H, time_itemsize)
    vmem_limit = int(min(budget, max(32 * 1024 * 1024, est)))
    return tq, tkv, Lp, vmem_limit


def _attention_core(Q, K, V, tK, tV, am, pr, bd, L_valid, tq, tkv, vmem_limit):
    B, Lp, H = Q.shape
    grid = (B, Lp // tq, Lp // tkv)
    kernel = functools.partial(_attn_kernel, L_valid, Lp)
    return pl.pallas_call(
        kernel,
        out_shape=jax.ShapeDtypeStruct((B, Lp, H), jnp.float32),
        grid=grid,
        in_specs=[
            pl.BlockSpec((1, tq, H), lambda b, qi, ki: (b, qi, 0)),           # Q (scaled)
            pl.BlockSpec((1, tkv, H), lambda b, qi, ki: (b, ki, 0)),          # K + abs_pos_K
            pl.BlockSpec((1, tkv, H), lambda b, qi, ki: (b, ki, 0)),          # V + abs_pos_V
            pl.BlockSpec((1, tq, tkv, H), lambda b, qi, ki: (b, qi, ki, 0)),  # time_matrix_K
            pl.BlockSpec((1, tq, tkv, H), lambda b, qi, ki: (b, qi, ki, 0)),  # time_matrix_V
            pl.BlockSpec((tq, tkv, 1), lambda b, qi, ki: (qi, ki, 0)),        # attn mask
            pl.BlockSpec((1, tq, 1), lambda b, qi, ki: (b, qi, 0)),           # row pad mask
            pl.BlockSpec((H, H), lambda b, qi, ki: (0, 0)),                   # head block-diag
        ],
        out_specs=pl.BlockSpec((1, tq, H), lambda b, qi, ki: (b, qi, 0)),
        scratch_shapes=[pltpu.VMEM((tq, H), jnp.float32),   # running max  (full lane width)
                        pltpu.VMEM((tq, H), jnp.float32)],  # running denominator
        compiler_params=pltpu.CompilerParams(
            dimension_semantics=("parallel", "parallel", "arbitrary"),
            vmem_limit_bytes=vmem_limit),
    )(Q, K, V, tK, tV, am, pr, bd)


# ---------------------------------------------------------------------------
# Wrapper: glue (projection, padding, mask prep) in plain JAX.
# ---------------------------------------------------------------------------
def time_aware_mha(params, queries, keys, time_mask, attn_mask,
                   time_matrix_K, time_matrix_V, abs_pos_K, abs_pos_V, head_num,
                   time_dtype=jnp.bfloat16):
    B, L, H = queries.shape
    assert H % head_num == 0
    d = H // head_num
    scale = 1.0 / float(d) ** 0.5
    f32 = jnp.float32

    # 1) Fused projections: Q pre-scaled, abs_pos_K/V folded into K/V.
    Qs, Kf, Vf = _qkv_proj(
        queries.reshape(B * L, H).astype(f32),
        keys.reshape(B * L, H).astype(f32),
        abs_pos_K.reshape(B * L, H).astype(f32),
        abs_pos_V.reshape(B * L, H).astype(f32),
        params["Wq"].astype(f32), params["bq"].astype(f32),
        params["Wk"].astype(f32), params["bk"].astype(f32),
        params["Wv"].astype(f32), params["bv"].astype(f32),
        scale)
    Qs = Qs.reshape(B, L, H)
    Kf = Kf.reshape(B, L, H)
    Vf = Vf.reshape(B, L, H)

    # 2) Tile plan; pad the sequence axis to the tile when needed.
    tq, tkv, Lp, vmem_limit = _plan_attention(L, H, jnp.dtype(time_dtype).itemsize)
    pad = Lp - L
    tK = time_matrix_K.astype(time_dtype)     # bf16 streaming of the dominant tensors
    tV = time_matrix_V.astype(time_dtype)
    am = attn_mask.astype(f32)
    pr = time_mask.astype(f32)
    if pad:
        Qs = jnp.pad(Qs, ((0, 0), (0, pad), (0, 0)))
        Kf = jnp.pad(Kf, ((0, 0), (0, pad), (0, 0)))
        Vf = jnp.pad(Vf, ((0, 0), (0, pad), (0, 0)))
        tK = jnp.pad(tK, ((0, 0), (0, pad), (0, pad), (0, 0)))
        tV = jnp.pad(tV, ((0, 0), (0, pad), (0, pad), (0, 0)))
        am = jnp.pad(am, ((0, pad), (0, pad)), constant_values=1.0)
        pr = jnp.pad(pr, ((0, 0), (0, pad)), constant_values=1.0)
    am = am.reshape(Lp, Lp, 1)
    pr = pr.reshape(B, Lp, 1)

    # Block-diagonal head-segment matrix: the single MXU dot that reduces the lane-dense
    # q*(K+tK) product per head and re-broadcasts the result to full lane width.
    head_id = jnp.arange(H, dtype=jnp.int32) // d
    bd = (head_id[:, None] == head_id[None, :]).astype(f32)

    out = _attention_core(Qs, Kf, Vf, tK, tV, am, pr, bd, L, tq, tkv, vmem_limit)
    return out[:, :L, :] if pad else out


# ---------------------------------------------------------------------------
# Pure-JAX reference (mirrors the PyTorch forward exactly) for validation.
# ---------------------------------------------------------------------------
def reference(params, queries, keys, time_mask, attn_mask,
              time_matrix_K, time_matrix_V, abs_pos_K, abs_pos_V, head_num):
    B, L, H = queries.shape
    d = H // head_num
    Q = queries @ params["Wq"] + params["bq"]
    K = keys @ params["Wk"] + params["bk"]
    V = keys @ params["Wv"] + params["bv"]

    split3 = lambda x: jnp.concatenate(jnp.split(x, head_num, axis=2), axis=0)
    split4 = lambda x: jnp.concatenate(jnp.split(x, head_num, axis=3), axis=0)
    Q_, K_, V_ = split3(Q), split3(K), split3(V)
    apK_, apV_ = split3(abs_pos_K), split3(abs_pos_V)
    tK_, tV_ = split4(time_matrix_K), split4(time_matrix_V)

    w = Q_ @ jnp.swapaxes(K_, 1, 2)
    w = w + Q_ @ jnp.swapaxes(apK_, 1, 2)
    w = w + jnp.squeeze(tK_ @ Q_[..., None], -1)
    w = w / (d ** 0.5)

    tm = jnp.broadcast_to(jnp.tile(time_mask[:, :, None], (head_num, 1, 1)), w.shape)
    am = jnp.broadcast_to(attn_mask[None], w.shape)
    neg = jnp.full(w.shape, -2.0 ** 32 + 1, jnp.float32)
    w = jnp.where(tm, neg, w)
    w = jnp.where(am, neg, w)
    w = jax.nn.softmax(w, axis=-1)

    out = w @ V_
    out = out + w @ apV_
    out = out + jnp.squeeze(w[:, :, None, :] @ tV_, 2)
    out = jnp.concatenate(jnp.split(out, head_num, axis=0), axis=2)
    return out


def _run_case(seed, B, L, H, head_num, atol):
    key = jax.random.PRNGKey(seed)
    ks = jax.random.split(key, 13)
    params = {
        "Wq": 0.1 * jax.random.normal(ks[0], (H, H), jnp.float32),  # already W^T layout
        "bq": 0.1 * jax.random.normal(ks[1], (1, H), jnp.float32),
        "Wk": 0.1 * jax.random.normal(ks[2], (H, H), jnp.float32),
        "bk": 0.1 * jax.random.normal(ks[3], (1, H), jnp.float32),
        "Wv": 0.1 * jax.random.normal(ks[4], (H, H), jnp.float32),
        "bv": 0.1 * jax.random.normal(ks[5], (1, H), jnp.float32),
    }
    queries = jax.random.normal(ks[6], (B, L, H), jnp.float32)
    keys_in = jax.random.normal(ks[7], (B, L, H), jnp.float32)
    abs_pos_K = jax.random.normal(ks[8], (B, L, H), jnp.float32)
    abs_pos_V = jax.random.normal(ks[9], (B, L, H), jnp.float32)
    time_matrix_K = jax.random.normal(ks[10], (B, L, L, H), jnp.float32)
    time_matrix_V = jax.random.normal(ks[11], (B, L, L, H), jnp.float32)
    time_mask = jax.random.uniform(ks[12], (B, L)) < 0.3                # pad-row mask
    attn_mask = jnp.triu(jnp.ones((L, L), dtype=bool), k=1)             # causal mask

    out = time_aware_mha(params, queries, keys_in, time_mask, attn_mask,
                         time_matrix_K, time_matrix_V, abs_pos_K, abs_pos_V, head_num)
    out = jax.block_until_ready(out)
    ref = reference(params, queries, keys_in, time_mask, attn_mask,
                    time_matrix_K, time_matrix_V, abs_pos_K, abs_pos_V, head_num)
    assert out.shape == (B, L, H)
    err = float(jnp.max(jnp.abs(out - ref)))
    assert jnp.allclose(out, ref, atol=atol, rtol=atol), f"mismatch vs reference: {err}"


if __name__ == "__main__":
    # Tolerance covers bf16 streaming of the (B, L, L, H) time tensors and the
    # online-softmax reassociation; real bugs produce O(1) errors.
    _run_case(0, B=2, L=8, H=32, head_num=4, atol=2e-2)     # single-tile path
    _run_case(1, B=2, L=150, H=32, head_num=4, atol=2e-2)   # padded, multi-tile flash path
    print("KERNEL_OK")
</pallas_src>

<mosaic_0001>
module attributes {stable_mosaic.version = 11 : i64} {
  func.func @_proj_kernel(%arg0: i32, %arg1: memref<16x32xf32, #tpu.memory_space<vmem>>, %arg2: memref<16x32xf32, #tpu.memory_space<vmem>>, %arg3: memref<16x32xf32, #tpu.memory_space<vmem>>, %arg4: memref<16x32xf32, #tpu.memory_space<vmem>>, %arg5: memref<32x32xf32, #tpu.memory_space<vmem>>, %arg6: memref<1x32xf32, #tpu.memory_space<vmem>>, %arg7: memref<32x32xf32, #tpu.memory_space<vmem>>, %arg8: memref<1x32xf32, #tpu.memory_space<vmem>>, %arg9: memref<32x32xf32, #tpu.memory_space<vmem>>, %arg10: memref<1x32xf32, #tpu.memory_space<vmem>>, %arg11: memref<16x32xf32, #tpu.memory_space<vmem>>, %arg12: memref<16x32xf32, #tpu.memory_space<vmem>>, %arg13: memref<16x32xf32, #tpu.memory_space<vmem>>) attributes {dimension_semantics = [#tpu.dimension_semantics<parallel>], iteration_bounds = array<i64: 1>, scalar_prefetch = 0 : i64, scratch_operands = 0 : i64, tpu.core_type = #tpu.core_type<tc>, window_params = [{transform_indices = @transform_0, window_bounds = array<i64: 16, 32>}, {transform_indices = @transform_1, window_bounds = array<i64: 16, 32>}, {transform_indices = @transform_2, window_bounds = array<i64: 16, 32>}, {transform_indices = @transform_3, window_bounds = array<i64: 16, 32>}, {pipeline_mode = #tpu.pipeline_mode<synchronous>, transform_indices = @transform_4, window_bounds = array<i64: 32, 32>}, {pipeline_mode = #tpu.pipeline_mode<synchronous>, transform_indices = @transform_5, window_bounds = array<i64: 1, 32>}, {pipeline_mode = #tpu.pipeline_mode<synchronous>, transform_indices = @transform_6, window_bounds = array<i64: 32, 32>}, {pipeline_mode = #tpu.pipeline_mode<synchronous>, transform_indices = @transform_7, window_bounds = array<i64: 1, 32>}, {pipeline_mode = #tpu.pipeline_mode<synchronous>, transform_indices = @transform_8, window_bounds = array<i64: 32, 32>}, {pipeline_mode = #tpu.pipeline_mode<synchronous>, transform_indices = @transform_9, window_bounds = array<i64: 1, 32>}, {transform_indices = @transform_10, window_bounds = array<i64: 16, 32>}, {transform_indices = @transform_11, window_bounds = array<i64: 16, 32>}, {transform_indices = @transform_12, window_bounds = array<i64: 16, 32>}]} {
    %c0 = arith.constant 0 : index
    %c0_0 = arith.constant 0 : index
    %0 = vector.load %arg1[%c0, %c0_0] : memref<16x32xf32, #tpu.memory_space<vmem>>, vector<16x32xf32>
    %c0_1 = arith.constant 0 : index
    %c0_2 = arith.constant 0 : index
    %1 = vector.load %arg5[%c0_1, %c0_2] : memref<32x32xf32, #tpu.memory_space<vmem>>, vector<32x32xf32>
    %cst = arith.constant dense<0.000000e+00> : vector<16x32xf32>
    %2 = tpu.matmul %0, %1, %cst {dimension_numbers = #tpu.dot_dimension_numbers<[1], [0], [0], [1], [0, 0, 1, 1], [], []>} : vector<16x32xf32>, vector<32x32xf32>, vector<16x32xf32> -> vector<16x32xf32>
    %c0_3 = arith.constant 0 : index
    %c0_4 = arith.constant 0 : index
    %3 = vector.load %arg6[%c0_3, %c0_4] : memref<1x32xf32, #tpu.memory_space<vmem>>, vector<1x32xf32>
    %4 = vector.broadcast %3 : vector<1x32xf32> to vector<16x32xf32>
    %5 = arith.addf %2, %4 : vector<16x32xf32>
    %cst_5 = arith.constant 0.353553385 : f32
    %6 = vector.broadcast %cst_5 : f32 to vector<16x32xf32>
    %7 = arith.mulf %5, %6 : vector<16x32xf32>
    %c0_6 = arith.constant 0 : index
    %c0_7 = arith.constant 0 : index
    %8 = vector.load %arg11[%c0_6, %c0_7] : memref<16x32xf32, #tpu.memory_space<vmem>>, vector<16x32xf32>
    tpu.vector_store %arg11[%c0_6, %c0_7], %7 {strides = array<i32>} : memref<16x32xf32, #tpu.memory_space<vmem>>, vector<16x32xf32>,
    %c0_8 = arith.constant 0 : index
    %c0_9 = arith.constant 0 : index
    %9 = vector.load %arg2[%c0_8, %c0_9] : memref<16x32xf32, #tpu.memory_space<vmem>>, vector<16x32xf32>
    %c0_10 = arith.constant 0 : index
    %c0_11 = arith.constant 0 : index
    %10 = vector.load %arg7[%c0_10, %c0_11] : memref<32x32xf32, #tpu.memory_space<vmem>>, vector<32x32xf32>
    %cst_12 = arith.constant dense<0.000000e+00> : vector<16x32xf32>
    %11 = tpu.matmul %9, %10, %cst_12 {dimension_numbers = #tpu.dot_dimension_numbers<[1], [0], [0], [1], [0, 0, 1, 1], [], []>} : vector<16x32xf32>, vector<32x32xf32>, vector<16x32xf32> -> vector<16x32xf32>
    %c0_13 = arith.constant 0 : index
    %c0_14 = arith.constant 0 : index
    %12 = vector.load %arg8[%c0_13, %c0_14] : memref<1x32xf32, #tpu.memory_space<vmem>>, vector<1x32xf32>
    %13 = vector.broadcast %12 : vector<1x32xf32> to vector<16x32xf32>
    %14 = arith.addf %11, %13 : vector<16x32xf32>
    %c0_15 = arith.constant 0 : index
    %c0_16 = arith.constant 0 : index
    %15 = vector.load %arg3[%c0_15, %c0_16] : memref<16x32xf32, #tpu.memory_space<vmem>>, vector<16x32xf32>
    %16 = arith.addf %14, %15 : vector<16x32xf32>
    %c0_17 = arith.constant 0 : index
    %c0_18 = arith.constant 0 : index
    %17 = vector.load %arg12[%c0_17, %c0_18] : memref<16x32xf32, #tpu.memory_space<vmem>>, vector<16x32xf32>
    tpu.vector_store %arg12[%c0_17, %c0_18], %16 {strides = array<i32>} : memref<16x32xf32, #tpu.memory_space<vmem>>, vector<16x32xf32>,
    %c0_19 = arith.constant 0 : index
    %c0_20 = arith.constant 0 : index
    %18 = vector.load %arg2[%c0_19, %c0_20] : memref<16x32xf32, #tpu.memory_space<vmem>>, vector<16x32xf32>
    %c0_21 = arith.constant 0 : index
    %c0_22 = arith.constant 0 : index
    %19 = vector.load %arg9[%c0_21, %c0_22] : memref<32x32xf32, #tpu.memory_space<vmem>>, vector<32x32xf32>
    %cst_23 = arith.constant dense<0.000000e+00> : vector<16x32xf32>
    %20 = tpu.matmul %18, %19, %cst_23 {dimension_numbers = #tpu.dot_dimension_numbers<[1], [0], [0], [1], [0, 0, 1, 1], [], []>} : vector<16x32xf32>, vector<32x32xf32>, vector<16x32xf32> -> vector<16x32xf32>
    %c0_24 = arith.constant 0 : index
    %c0_25 = arith.constant 0 : index
    %21 = vector.load %arg10[%c0_24, %c0_25] : memref<1x32xf32, #tpu.memory_space<vmem>>, vector<1x32xf32>
    %22 = vector.broadcast %21 : vector<1x32xf32> to vector<16x32xf32>
    %23 = arith.addf %20, %22 : vector<16x32xf32>
    %c0_26 = arith.constant 0 : index
    %c0_27 = arith.constant 0 : index
    %24 = vector.load %arg4[%c0_26, %c0_27] : memref<16x32xf32, #tpu.memory_space<vmem>>, vector<16x32xf32>
    %25 = arith.addf %23, %24 : vector<16x32xf32>
    %c0_28 = arith.constant 0 : index
    %c0_29 = arith.constant 0 : index
    %26 = vector.load %arg13[%c0_28, %c0_29] : memref<16x32xf32, #tpu.memory_space<vmem>>, vector<16x32xf32>
    tpu.vector_store %arg13[%c0_28, %c0_29], %25 {strides = array<i32>} : memref<16x32xf32, #tpu.memory_space<vmem>>, vector<16x32xf32>,
    return
  }
  func.func @transform_0(%arg0: i32) -> (i32, i32) {
    %c0_i32 = arith.constant 0 : i32
    %c0_i32_0 = arith.constant 0 : i32
    return %arg0, %c0_i32 : i32, i32
  }
  func.func @transform_1(%arg0: i32) -> (i32, i32) {
    %c0_i32 = arith.constant 0 : i32
    %c0_i32_0 = arith.constant 0 : i32
    return %arg0, %c0_i32 : i32, i32
  }
  func.func @transform_2(%arg0: i32) -> (i32, i32) {
    %c0_i32 = arith.constant 0 : i32
    %c0_i32_0 = arith.constant 0 : i32
    return %arg0, %c0_i32 : i32, i32
  }
  func.func @transform_3(%arg0: i32) -> (i32, i32) {
    %c0_i32 = arith.constant 0 : i32
    %c0_i32_0 = arith.constant 0 : i32
    return %arg0, %c0_i32 : i32, i32
  }
  func.func @transform_4(%arg0: i32) -> (i32, i32) {
    %c0_i32 = arith.constant 0 : i32
    %c0_i32_0 = arith.constant 0 : i32
    %c0_i32_1 = arith.constant 0 : i32
    return %c0_i32, %c0_i32_0 : i32, i32
  }
  func.func @transform_5(%arg0: i32) -> (i32, i32) {
    %c0_i32 = arith.constant 0 : i32
    %c0_i32_0 = arith.constant 0 : i32
    %c0_i32_1 = arith.constant 0 : i32
    return %c0_i32, %c0_i32_0 : i32, i32
  }
  func.func @transform_6(%arg0: i32) -> (i32, i32) {
    %c0_i32 = arith.constant 0 : i32
    %c0_i32_0 = arith.constant 0 : i32
    %c0_i32_1 = arith.constant 0 : i32
    return %c0_i32, %c0_i32_0 : i32, i32
  }
  func.func @transform_7(%arg0: i32) -> (i32, i32) {
    %c0_i32 = arith.constant 0 : i32
    %c0_i32_0 = arith.constant 0 : i32
    %c0_i32_1 = arith.constant 0 : i32
    return %c0_i32, %c0_i32_0 : i32, i32
  }
  func.func @transform_8(%arg0: i32) -> (i32, i32) {
    %c0_i32 = arith.constant 0 : i32
    %c0_i32_0 = arith.constant 0 : i32
    %c0_i32_1 = arith.constant 0 : i32
    return %c0_i32, %c0_i32_0 : i32, i32
  }
  func.func @transform_9(%arg0: i32) -> (i32, i32) {
    %c0_i32 = arith.constant 0 : i32
    %c0_i32_0 = arith.constant 0 : i32
    %c0_i32_1 = arith.constant 0 : i32
    return %c0_i32, %c0_i32_0 : i32, i32
  }
  func.func @transform_10(%arg0: i32) -> (i32, i32) {
    %c0_i32 = arith.constant 0 : i32
    %c0_i32_0 = arith.constant 0 : i32
    return %arg0, %c0_i32 : i32, i32
  }
  func.func @transform_11(%arg0: i32) -> (i32, i32) {
    %c0_i32 = arith.constant 0 : i32
    %c0_i32_0 = arith.constant 0 : i32
    return %arg0, %c0_i32 : i32, i32
  }
  func.func @transform_12(%arg0: i32) -> (i32, i32) {
    %c0_i32 = arith.constant 0 : i32
    %c0_i32_0 = arith.constant 0 : i32
    return %arg0, %c0_i32 : i32, i32
  }
}

</mosaic_0001>

<bundles_post_ra>
// kernel: tpu_custom_call.1
= control target key start
LH: loop header
LB: loop body
LE: loop exit
PB: predicated region body
PF: predicated region fallthrough
CT: control target
= control target key end

     0   :  { %18 = vsyncpa [#allocation3], 0  ;;  %s927_s0 = inlined_call_operand.hbm [shape: f32[16,32], index: 0, kind: input, shape index: {}]   ;;  %s928_s1 = inlined_call_operand.hbm [shape: f32[16,32], index: 1, kind: input, shape index: {}]   ;;  %s929_s2 = inlined_call_operand.hbm [shape: f32[16,32], index: 2, kind: input, shape index: {}]   ;;  %s930_s3 = inlined_call_operand.hbm [shape: f32[16,32], index: 3, kind: input, shape index: {}]   ;;  %s931_s4 = inlined_call_operand.hbm [shape: f32[32,32], index: 4, kind: input, shape index: {}]   ;;  %s932_s5 = inlined_call_operand.vmem [shape: f32[1,32], index: 5, kind: input, shape index: {}]   ;;  %s933_s6 = inlined_call_operand.hbm [shape: f32[32,32], index: 6, kind: input, shape index: {}]   ;;  %s934_s7 = inlined_call_operand.vmem [shape: f32[1,32], index: 7, kind: input, shape index: {}]   ;;  %s935_s8 = inlined_call_operand.hbm [shape: f32[32,32], index: 8, kind: input, shape index: {}]   ;;  %s936_s9 = inlined_call_operand.vmem [shape: f32[1,32], index: 9, kind: input, shape index: {}]   ;;  %s937_s10 = inlined_call_operand.hbm [shape: f32[16,32], index: 10, kind: output, shape index: {0}]   ;;  %s938_s11 = inlined_call_operand.hbm [shape: f32[16,32], index: 11, kind: output, shape index: {1}]   ;;  %s939_s12 = inlined_call_operand.hbm [shape: f32[16,32], index: 12, kind: output, shape index: {2}]  }
   0x1   :  { %19 = vsyncpa [#allocation6], 0 }
   0x2   :  { %20 = vsyncpa [#allocation9], 0 }
   0x3   :  { %21 = vsyncpa [#allocation12], 0 }
   0x4   :  { %22 = vsyncpa [#allocation4], 0 }
   0x5   :  { %23 = vsyncpa [#allocation16], 0  ;;  %s769_s21 = smov [#allocation5]   ;;  %s770_s23 = smov [#allocation8]  }
   0x6   :  { %s41_s22 = sshll.u32 %s769_s21, 4  ;;  %s65_s24 = sshll.u32 %s770_s23, 4  ;;  %s42_s22 = int_to_ptr.vmem [resolvable:$true] %s41_s22  ;;  %s66_s24 = int_to_ptr.vmem [resolvable:$true] %s65_s24 }
   0x7   :  { %s565_s25 = scalar_lea.vmem %s42_s22, 256  ;;  %p570_p1 = scmp.lt.s32.totalorder %s42_s22, %s42_s22 }
   0x8   :  { %p566_p0 = scmp.ne.s32.totalorder %s42_s22, %s565_s25  ;;  %p571_p2 = scmp.lt.s32.totalorder %s565_s25, %s565_s25 }
   0xa   :  { %p572_p3 = por %p571_p2, %p570_p1 }
   0xc   :  { %p573_p4 = pnand %p572_p3, %p566_p0 }
   0xe   :  { %576 = shalt.err (!%p573_p4)
}
   0xf   :  { %s771_s26 = smov 128   ;;  %s772_s27 = smov 8  }
  0x10   :  { %47 = dma.hbm_to_vmem [thread:$0]  %s928_s1, 256, %s42_s22, [#allocation6], %s771_s26, %s771_s26, %s772_s27  }
  0x11   :  { %s585_s30 = scalar_lea.vmem %s66_s24, 256  ;;  %p590_p6 = scmp.lt.s32.totalorder %s66_s24, %s66_s24 }
  0x12   :  { %p586_p5 = scmp.ne.s32.totalorder %s66_s24, %s585_s30  ;;  %p591_p7 = scmp.lt.s32.totalorder %s585_s30, %s585_s30 }
  0x14   :  { %p592_p8 = por %p591_p7, %p590_p6 }
  0x16   :  { %p593_p9 = pnand %p592_p8, %p586_p5 }
  0x18   :  { %596 = shalt.err (!%p593_p9)
}
  0x19   :  { %71 = dma.hbm_to_vmem [thread:$0]  %s930_s3, 256, %s66_s24, [#allocation9], %s771_s26, %s771_s26, %s772_s27  }
  0x1a   :  { %s773_s15 = smov [#allocation11]   ;;  %s774_s17 = smov [#allocation2]  }
  0x1b   :  { %s91_s16 = sshll.u32 %s773_s15, 4  ;;  %s29_s18 = sshll.u32 %s774_s17, 4  ;;  %s92_s16 = int_to_ptr.vmem [resolvable:$true] %s91_s16  ;;  %s30_s18 = int_to_ptr.vmem [resolvable:$true] %s29_s18 }
  0x1c   :  { %s605_s1 = scalar_lea.vmem %s92_s16, 512  ;;  %p610_p11 = scmp.lt.s32.totalorder %s92_s16, %s92_s16 }
  0x1d   :  { %p606_p10 = scmp.ne.s32.totalorder %s92_s16, %s605_s1  ;;  %p611_p12 = scmp.lt.s32.totalorder %s605_s1, %s605_s1 }
  0x1f   :  { %p612_p13 = por %p611_p12, %p610_p11 }
  0x21   :  { %p613_p0 = pnand %p612_p13, %p606_p10 }
  0x23   :  { %616 = shalt.err (!%p613_p0)
}
  0x24   :  { %97 = dma.hbm_to_vmem [thread:$0]  %s933_s6, 512, %s92_s16, [#allocation12], %s771_s26, %s771_s26, %s772_s27  }
  0x25   :  { %s625_s3 = scalar_lea.vmem %s30_s18, 256  ;;  %p630_p2 = scmp.lt.s32.totalorder %s30_s18, %s30_s18 }
  0x26   :  { %p626_p1 = scmp.ne.s32.totalorder %s30_s18, %s625_s3  ;;  %p631_p3 = scmp.lt.s32.totalorder %s625_s3, %s625_s3 }
  0x28   :  { %p632_p4 = por %p631_p3, %p630_p2 }
  0x2a   :  { %p633_p5 = pnand %p632_p4, %p626_p1 }
  0x2c   :  { %636 = shalt.err (!%p633_p5)
}
  0x2d   :  { %35 = dma.hbm_to_vmem [thread:$0]  %s927_s0, 256, %s30_s18, [#allocation3], %s771_s26, %s771_s26, %s772_s27  }
  0x2e   :  { %s775_s23 = smov [#allocation7]   ;;  %s776_s25 = smov [#allocation10]  }
  0x2f   :  { %s53_s24 = sshll.u32 %s775_s23, 4  ;;  %s77_s28 = sshll.u32 %s776_s25, 4  ;;  %s54_s24 = int_to_ptr.vmem [resolvable:$true] %s53_s24  ;;  %s78_s28 = int_to_ptr.vmem [resolvable:$true] %s77_s28 }
  0x30   :  { %s645_s6 = scalar_lea.vmem %s54_s24, 256  ;;  %p650_p7 = scmp.lt.s32.totalorder %s54_s24, %s54_s24 }
  0x31   :  { %p646_p6 = scmp.ne.s32.totalorder %s54_s24, %s645_s6  ;;  %p651_p8 = scmp.lt.s32.totalorder %s645_s6, %s645_s6 }
  0x33   :  { %p652_p9 = por %p651_p8, %p650_p7 }
  0x35   :  { %p653_p10 = pnand %p652_p9, %p646_p6 }
  0x37   :  { %656 = shalt.err (!%p653_p10)
}
  0x38   :  { %59 = dma.hbm_to_vmem [thread:$0]  %s929_s2, 256, %s54_s24, [#allocation6], %s771_s26, %s771_s26, %s772_s27  }
  0x39   :  { %s665_s0 = scalar_lea.vmem %s78_s28, 512  ;;  %p670_p12 = scmp.lt.s32.totalorder %s78_s28, %s78_s28 }
  0x3a   :  { %p666_p11 = scmp.ne.s32.totalorder %s78_s28, %s665_s0  ;;  %p671_p13 = scmp.lt.s32.totalorder %s665_s0, %s665_s0 }
  0x3c   :  { %p672_p0 = por %p671_p13, %p670_p12 }
  0x3e   :  { %p673_p1 = pnand %p672_p0, %p666_p11 }
  0x40   :  { %676 = shalt.err (!%p673_p1)
}
  0x41   :  { %83 = dma.hbm_to_vmem [thread:$0]  %s931_s4, 512, %s78_s28, [#allocation9], %s771_s26, %s771_s26, %s772_s27  }
  0x42   :  { %s777_s15 = smov [#allocation13]  }
  0x43   :  { %s105_s16 = sshll.u32 %s777_s15, 4  ;;  %s106_s16 = int_to_ptr.vmem [resolvable:$true] %s105_s16 }
  0x44   :  { %s685_s17 = scalar_lea.vmem %s106_s16, 512  ;;  %p690_p3 = scmp.lt.s32.totalorder %s106_s16, %s106_s16 }
  0x45   :  { %p686_p2 = scmp.ne.s32.totalorder %s106_s16, %s685_s17  ;;  %p691_p4 = scmp.lt.s32.totalorder %s685_s17, %s685_s17 }
  0x47   :  { %p692_p5 = por %p691_p4, %p690_p3 }
  0x49   :  { %p693_p6 = pnand %p692_p5, %p686_p2 }
  0x4b   :  { %696 = shalt.err (!%p693_p6)
}
  0x4c   :  { %111 = dma.hbm_to_vmem [thread:$0]  %s935_s8, 512, %s106_s16, [#allocation12], %s771_s26, %s771_s26, %s772_s27  }
  0x4d   :  { %757 = dma.done.wait [#allocation3], 256  }
  0x4e   :  { %758 = vsyncadd [#allocation3], 4294967040 }
  0x4f   :  { %759 = dma.done.wait [#allocation6], 512  }
  0x50   :  { %760 = vsyncadd [#allocation6], 4294966784 }
  0x51   :  { %761 = dma.done.wait [#allocation9], 768  }
  0x52   :  { %762 = vsyncadd [#allocation9], 4294966528 }
  0x53   :  { %763 = dma.done.wait [#allocation12], 1024  }
  0x54   :  { %764 = vsyncadd [#allocation12], 4294966272  ;;  %v140_v0 = vld [vmem:[#allocation10 + $0x18] sm:$0xff]  ;;  %v139_v1 = vld [vmem:[#allocation10 + $0x10] sm:$0xff]  ;;  %vm148_vm0 = vcmask 261120   ;;  %s778_s20 = smov [#allocation14]  }
  0x55   :  { %512 = vmatprep.subr.mxu0 %v140_v0  ;;  %v239_v2 = vld [vmem:[#allocation11 + $0x18] sm:$0xff]  ;;  %v135_v3 = vld [vmem:[#allocation2] sm:$0xff]  ;;  %v138_v4 = vld [vmem:[#allocation10 + $0x8] sm:$0xff]  ;;  %s439_s3 = sshll.u32 %s778_s20, 4  ;;  %s779_s22 = smov [#allocation15]   ;;  %s440_s3 = int_to_ptr.vmem [resolvable:$true] %s439_s3 }
  0x56   :  { %513 = vmatpush3.msra.mxu0 %v140_v0  ;;  %523 = vmatprep.subr.mxu1 %v239_v2  ;;  %v238_v5 = vld [vmem:[#allocation11 + $0x10] sm:$0xff]  ;;  %v137_v6 = vld [vmem:[#allocation10] sm:$0xff]  ;;  %v237_v7 = vld [vmem:[#allocation11 + $0x8] sm:$0xff]  ;;  %s451_s23 = sshll.u32 %s779_s22, 4  ;;  %p702_p8 = scmp.lt.s32.totalorder %s440_s3, %s440_s3  ;;  %s452_s23 = int_to_ptr.vmem [resolvable:$true] %s451_s23 }
  0x57   :  { %514 = vmatprep.subr.mxu0 %v139_v1  ;;  %524 = vmatpush3.msra.mxu1 %v239_v2  ;;  %v136_v8 = vld [vmem:[#allocation2 + $0x8] sm:$0xff]  ;;  %v339_v9 = vld [vmem:[#allocation13 + $0x18] sm:$0xff]  ;;  %v236_v10 = vld [vmem:[#allocation11] sm:$0xff] }
  0x58   :  { %515 = vmatpush3.msra.mxu0 %v139_v1  ;;  %520 = vmatprep.mubr.msk.f32.mxu0 %vm148_vm0, %v135_v3  ;;  %v338_v11 = vld [vmem:[#allocation13 + $0x10] sm:$0xff]  ;;  %v337_v13 = vld [vmem:[#allocation13 + $0x8] sm:$0xff]  ;;  %v235_v14 = vld [vmem:[#allocation5 + $0x8] sm:$0xff] }
  0x59   :  { %516 = vmatprep.subr.mxu0 %v138_v4  ;;  %525 = vmatprep.subr.mxu1 %v238_v5  ;;  %v234_v12 = vld [vmem:[#allocation5] sm:$0xff]  ;;  %v336_v15 = vld [vmem:[#allocation13] sm:$0xff]  ;;  %v329_v24 = vld [vmem:[#allocation7 + $0x8] sm:$0xff] }
  0x5a   :  { %517 = vmatpush3.msra.mxu0 %v138_v4  ;;  %526 = vmatpush3.msra.mxu1 %v238_v5  ;;  %v485_v16 = vld [vmem:[%s932_s5] ss:$0 sm:$0xff]  ;;  %v429_v33 = vld [vmem:[#allocation8 + $0x8] sm:$0xff] }
  0x5b   :  { %518 = vmatprep.subr.mxu0 %v137_v6  ;;  %527 = vmatprep.subr.mxu1 %v237_v7  ;;  %v488_v20 = vld [vmem:[%s934_s7] ss:$0 sm:$0xff]  ;;  %s697_s7 = scalar_lea.vmem %s440_s3, 256 }
  0x5c   :  { %519 = vmatpush3.msra.mxu0 %v137_v6  ;;  %528 = vmatpush3.msra.mxu1 %v237_v7  ;;  %v328_v28 = vld [vmem:[#allocation7] sm:$0xff]  ;;  %p698_p7 = scmp.ne.s32.totalorder %s440_s3, %s697_s7  ;;  %p703_p9 = scmp.lt.s32.totalorder %s697_s7, %s697_s7 }
  0x5d   :  { %521 = vmatmul.mubr.msk.f32.vlgmr.msra.gmra.mxu0 %vm148_vm0, %v136_v8  ;;  %534 = vmatprep.subr.mxu0 %v339_v9  ;;  %v491_v29 = vld [vmem:[%s936_s9] ss:$0 sm:$0xff] }
  0x5e   :  { %535 = vmatpush3.msra.mxu0 %v339_v9  ;;  %529 = vmatprep.subr.mxu1 %v236_v10  ;;  %p704_p10 = por %p703_p9, %p702_p8 }
  0x5f   :  { %536 = vmatprep.subr.mxu0 %v338_v11  ;;  %530 = vmatpush3.msra.mxu1 %v236_v10 }
  0x60   :  { %537 = vmatpush3.msra.mxu0 %v338_v11  ;;  %531 = vmatprep.mubr.msk.f32.mxu1 %vm148_vm0, %v234_v12  ;;  %p705_p11 = pnand %p704_p10, %p698_p7 }
  0x61   :  { %538 = vmatprep.subr.mxu0 %v337_v13  ;;  %532 = vmatmul.mubr.msk.f32.vlgmr.msra.gmra.mxu1 %vm148_vm0, %v235_v14 }
  0x62   :  { %539 = vmatpush3.msra.mxu0 %v337_v13  ;;  %542 = vmatprep.mubr.msk.f32.mxu0 %vm148_vm0, %v234_v12 }
  0x63   :  { %540 = vmatprep.subr.mxu0 %v336_v15 }
  0x64   :  { %541 = vmatpush3.msra.mxu0 %v336_v15 }
  0x65   :  { %543 = vmatmul.mubr.msk.f32.vlgmr.msra.gmra.mxu0 %vm148_vm0, %v235_v14 }
 0x11d   :  { %v522_v17 = vpop.f32.mrf.mxu0 }
 0x11e   :  { %v227_v18 = vadd.f32 %v522_v17, %v485_v16 }
 0x11f   :  { %v221_v19 = vpop.f32.mrf.mxu0 }
 0x120   :  { %v231_v21 = vmul.f32 0.35355338, %v227_v18  ;;  %v222_v22 = vadd.f32 %v485_v16, %v221_v19 }
 0x121   :  { %v533_v23 = vpop.f32.mrf.mxu1 }
 0x122   :  { %233 = vst.msk [vmem:[#allocation14 + $0x8] sm:$0xff] %vm148_vm0, %v231_v21  ;;  %v230_v25 = vmul.f32 0.35355338, %v222_v22  ;;  %v325_v26 = vadd.f32 %v533_v23, %v488_v20 }
 0x123   :  { %v319_v27 = vpop.f32.mrf.mxu1 }
 0x124   :  { %232 = vst.msk [vmem:[#allocation14] sm:$0xff] %vm148_vm0, %v230_v25  ;;  %v331_v30 = vadd.f32 %v329_v24, %v325_v26  ;;  %v320_v31 = vadd.f32 %v488_v20, %v319_v27 }
 0x125   :  { %v544_v32 = vpop.f32.mrf.mxu0 }
 0x126   :  { %708 = shalt.err (!%p705_p11)
}
 0x127   :  { %445 = dma.vmem_to_hbm [thread:$0]  %s440_s3, 256, %s937_s10, [#allocation4], %s771_s26, %s771_s26, %s772_s27   ;;  %333 = vst.msk [vmem:[#allocation15 + $0x8] sm:$0xff] %vm148_vm0, %v331_v30  ;;  %v330_v34 = vadd.f32 %v328_v28, %v320_v31  ;;  %v425_v35 = vadd.f32 %v544_v32, %v491_v29  ;;  %v419_v36 = vpop.f32.mrf.mxu0  ;;  %v428_v37 = vld [vmem:[#allocation8] sm:$0xff] }
 0x128   :  { %s780_s25 = smov [#allocation17]   ;;  %v420_v39 = vadd.f32 %v491_v29, %v419_v36  ;;  %s717_s6 = scalar_lea.vmem %s452_s23, 256 }
 0x129   :  { %s463_s28 = sshll.u32 %s780_s25, 4  ;;  %332 = vst.msk [vmem:[#allocation15] sm:$0xff] %vm148_vm0, %v330_v34  ;;  %v431_v38 = vadd.f32 %v429_v33, %v425_v35  ;;  %p718_p12 = scmp.ne.s32.totalorder %s452_s23, %s717_s6  ;;  %s464_s28 = int_to_ptr.vmem [resolvable:$true] %s463_s28 }
 0x12a   :  { %p722_p13 = scmp.lt.s32.totalorder %s452_s23, %s452_s23  ;;  %p723_p0 = scmp.lt.s32.totalorder %s717_s6, %s717_s6 }
 0x12c   :  { %p724_p1 = por %p723_p0, %p722_p13 }
 0x12e   :  { %p725_p2 = pnand %p724_p1, %p718_p12 }
 0x130   :  { %728 = shalt.err (!%p725_p2)
}
 0x131   :  { %457 = dma.vmem_to_hbm [thread:$0]  %s452_s23, 256, %s938_s11, [#allocation16], %s771_s26, %s771_s26, %s772_s27   ;;  %433 = vst.msk [vmem:[#allocation17 + $0x8] sm:$0xff] %vm148_vm0, %v431_v38  ;;  %v430_v40 = vadd.f32 %v428_v37, %v420_v39 }
 0x132   :  { %s737_s30 = scalar_lea.vmem %s464_s28, 256  ;;  %p742_p4 = scmp.lt.s32.totalorder %s464_s28, %s464_s28 }
 0x133   :  { %432 = vst.msk [vmem:[#allocation17] sm:$0xff] %vm148_vm0, %v430_v40  ;;  %p738_p3 = scmp.ne.s32.totalorder %s464_s28, %s737_s30  ;;  %p743_p5 = scmp.lt.s32.totalorder %s737_s30, %s737_s30 }
 0x135   :  { %p744_p6 = por %p743_p5, %p742_p4 }
 0x137   :  { %p745_p7 = pnand %p744_p6, %p738_p3 }
 0x139   :  { %748 = shalt.err (!%p745_p7)
}
 0x13a   :  { %469 = dma.vmem_to_hbm [thread:$0]  %s464_s28, 256, %s939_s12, [#allocation16], %s771_s26, %s771_s26, %s772_s27  }
 0x13b   :  { %765 = dma.done.wait [#allocation4], 256  }
 0x13c   :  { %766 = vsyncadd [#allocation4], 4294967040 }
 0x13d   :  { %767 = dma.done.wait [#allocation16], 512  }
 0x13e   :  { %768 = vsyncadd [#allocation16], 4294966784 }
 0x13f   :  { %479 = vsyncpa [#allocation3], 1 }
 0x140   :  { %480 = vsyncpa [#allocation6], 1 }
 0x141   :  { %481 = vsyncpa [#allocation9], 1 }
 0x142   :  { %482 = vsyncpa [#allocation12], 1 }
 0x143   :  { %483 = vsyncpa [#allocation4], 1 }
 0x144   :  { %484 = vsyncpa [#allocation16], 1 }

</bundles_post_ra>
